<compile_context>
chip_gen: v5e
topology: v5e:2x2
jax: 0.10.0
libtpu: 0.0.40
codegen_flags: <defaults>
</compile_context>

<pallas_src>
import jax
import jax.numpy as jnp
from jax import lax
from jax.experimental import pallas as pl
from jax.experimental.pallas import tpu as pltpu


def resnet_head_kernel(x_ref, w_ref, b_ref, o_ref):
    # x_ref: [TB, S, C]  lane-dense feature block (C=2048 on lanes), bf16
    # w_ref: [N, C]      Linear weight in native PyTorch (out x in) layout, f32
    # b_ref: [1, N]      Linear bias, f32
    # o_ref: [TB, N]     logits for this batch tile, f32
    inv_s = 1.0 / x_ref.shape[1]                              # static 1/(H*W)
    # Global average pool: sublane reduce with the bf16->f32 cast fused into
    # the reduction (no materialized f32 copy of the block).
    pooled = jnp.sum(x_ref[...], axis=1, dtype=jnp.float32) * inv_s   # [TB, C]
    # Dropout(p=0.25) is identity at inference.
    h = jnp.maximum(pooled, 0.0)                              # ReLU    [TB, C]
    # [TB, C] x [N, C] -> [TB, N], contract over C on the (idle) MXU.
    out = lax.dot_general(h, w_ref[...],
                          dimension_numbers=(((1,), (1,)), ((), ())),
                          preferred_element_type=jnp.float32)
    o_ref[...] = (out + b_ref[...]).astype(o_ref.dtype)


def resnet50_head(feat_nchw, w, b, *, batch_tile=None):
    """feat_nchw: [B, C, H, W] ResNet-50 layer4 output (bf16 recommended).
    w: [N, C] Linear weight (native out x in layout), b: [N] bias.
    Returns [B, N] f32 logits.

    batch_tile: None -> single grid step (best on single-TC v5e/v6e).
    On v7x use batch_tile = pl.cdiv(B, 2) so both TensorCores get work; keep
    2 * batch_tile * ~224 KiB (double-buffered input) well under the 32 MiB
    default scoped VMEM.
    """
    B, C, H, W = feat_nchw.shape
    N = w.shape[0]
    S = H * W

    # Lane-dense layout: [B, HW, C] puts C=2048 on lanes.  This transpose is an
    # XLA op (one extra HBM round trip); see TODO(synk) above about having the
    # producer emit this layout so it becomes free.
    x = jnp.transpose(feat_nchw, (0, 2, 3, 1)).reshape(B, S, C)
    b2 = b.reshape(1, N).astype(jnp.float32)
    w32 = w.astype(jnp.float32)

    if batch_tile is None:
        batch_tile = B
    batch_tile = min(batch_tile, B)
    grid = (pl.cdiv(B, batch_tile),)   # partial last block masked by Pallas

    out = pl.pallas_call(
        resnet_head_kernel,
        out_shape=jax.ShapeDtypeStruct((B, N), jnp.float32),
        grid=grid,
        in_specs=[
            pl.BlockSpec((batch_tile, S, C), lambda i: (i, 0, 0)),
            pl.BlockSpec((N, C), lambda i: (0, 0)),
            pl.BlockSpec((1, N), lambda i: (0, 0)),
        ],
        out_specs=pl.BlockSpec((batch_tile, N), lambda i: (i, 0)),
        compiler_params=pltpu.CompilerParams(
            # Batch axis shardable across TensorCores (v7x megacore); the
            # working set (<1 MiB double-buffered) is far under default VMEM.
            dimension_semantics=("parallel",)),
    )(x, w32, b2)
    return out


def reference_head(feat_nchw, w, b):
    x = feat_nchw.astype(jnp.float32)
    pooled = jnp.mean(x, axis=(2, 3))                  # [B, C]
    h = jnp.maximum(pooled, 0.0)                       # dropout=identity, relu
    return h @ w.T + b                                 # [B, N]


if __name__ == "__main__":
    key = jax.random.PRNGKey(0)
    k_feat, k_w, k_b = jax.random.split(key, 3)

    B, C, H, W = 2, 2048, 7, 7        # ResNet-50 layer4 output for 224x224 input
    n_classes = 4                     # Model(..., n_classes=4)

    feat = jax.random.normal(k_feat, (B, C, H, W), dtype=jnp.float32).astype(
        jnp.bfloat16)
    # Custom fc: nn.Linear(2048, 4), native PyTorch [out, in] weight layout.
    bound = 1.0 / (C ** 0.5)
    w = jax.random.uniform(k_w, (n_classes, C), jnp.float32, -bound, bound)
    b = jax.random.uniform(k_b, (n_classes,), jnp.float32, -bound, bound)

    out = resnet50_head(feat, w, b)
    out = jax.block_until_ready(out)

    ref = reference_head(feat, w, b)
    assert out.shape == (B, n_classes)
    assert jnp.allclose(out, ref, atol=1e-3, rtol=1e-3)

    print("KERNEL_OK")
</pallas_src>

<mosaic_0001>
module attributes {stable_mosaic.version = 11 : i64} {
  func.func @resnet_head_kernel(%arg0: i32, %arg1: memref<2x49x2048xbf16, #tpu.memory_space<vmem>>, %arg2: memref<4x2048xf32, #tpu.memory_space<vmem>>, %arg3: memref<1x4xf32, #tpu.memory_space<vmem>>, %arg4: memref<2x4xf32, #tpu.memory_space<vmem>>) attributes {dimension_semantics = [#tpu.dimension_semantics<parallel>], iteration_bounds = array<i64: 1>, scalar_prefetch = 0 : i64, scratch_operands = 0 : i64, tpu.core_type = #tpu.core_type<tc>, window_params = [{transform_indices = @transform_0, window_bounds = array<i64: 2, 49, 2048>}, {pipeline_mode = #tpu.pipeline_mode<synchronous>, transform_indices = @transform_1, window_bounds = array<i64: 4, 2048>}, {pipeline_mode = #tpu.pipeline_mode<synchronous>, transform_indices = @transform_2, window_bounds = array<i64: 1, 4>}, {transform_indices = @transform_3, window_bounds = array<i64: 2, 4>}]} {
    %c0 = arith.constant 0 : index
    %c0_0 = arith.constant 0 : index
    %c0_1 = arith.constant 0 : index
    %0 = vector.load %arg1[%c0, %c0_0, %c0_1] : memref<2x49x2048xbf16, #tpu.memory_space<vmem>>, vector<2x49x2048xbf16>
    %1 = arith.extf %0 : vector<2x49x2048xbf16> to vector<2x49x2048xf32>
    %cst = arith.constant dense<0.000000e+00> : vector<2x2048xf32>
    %2 = vector.multi_reduction <add>, %1, %cst [1] : vector<2x49x2048xf32> to vector<2x2048xf32>
    %cst_2 = arith.constant 0.0204081628 : f32
    %3 = vector.broadcast %cst_2 : f32 to vector<2x2048xf32>
    %4 = arith.mulf %2, %3 : vector<2x2048xf32>
    %cst_3 = arith.constant 0.000000e+00 : f32
    %5 = vector.broadcast %cst_3 : f32 to vector<2x2048xf32>
    %6 = arith.maximumf %4, %5 : vector<2x2048xf32>
    %c0_4 = arith.constant 0 : index
    %c0_5 = arith.constant 0 : index
    %7 = vector.load %arg2[%c0_4, %c0_5] : memref<4x2048xf32, #tpu.memory_space<vmem>>, vector<4x2048xf32>
    %cst_6 = arith.constant dense<0.000000e+00> : vector<2x4xf32>
    %8 = tpu.matmul %6, %7, %cst_6 {dimension_numbers = #tpu.dot_dimension_numbers<[1], [1], [0], [0], [0, 0, 1, 0], [], []>} : vector<2x2048xf32>, vector<4x2048xf32>, vector<2x4xf32> -> vector<2x4xf32>
    %c0_7 = arith.constant 0 : index
    %c0_8 = arith.constant 0 : index
    %9 = vector.load %arg3[%c0_7, %c0_8] : memref<1x4xf32, #tpu.memory_space<vmem>>, vector<1x4xf32>
    %10 = vector.broadcast %9 : vector<1x4xf32> to vector<2x4xf32>
    %11 = arith.addf %8, %10 : vector<2x4xf32>
    %c0_9 = arith.constant 0 : index
    %c0_10 = arith.constant 0 : index
    %12 = vector.load %arg4[%c0_9, %c0_10] : memref<2x4xf32, #tpu.memory_space<vmem>>, vector<2x4xf32>
    tpu.vector_store %arg4[%c0_9, %c0_10], %11 {strides = array<i32>} : memref<2x4xf32, #tpu.memory_space<vmem>>, vector<2x4xf32>,
    return
  }
  func.func @transform_0(%arg0: i32) -> (i32, i32, i32) {
    %c0_i32 = arith.constant 0 : i32
    %c0_i32_0 = arith.constant 0 : i32
    %c0_i32_1 = arith.constant 0 : i32
    return %arg0, %c0_i32, %c0_i32_0 : i32, i32, i32
  }
  func.func @transform_1(%arg0: i32) -> (i32, i32) {
    %c0_i32 = arith.constant 0 : i32
    %c0_i32_0 = arith.constant 0 : i32
    %c0_i32_1 = arith.constant 0 : i32
    return %c0_i32, %c0_i32_0 : i32, i32
  }
  func.func @transform_2(%arg0: i32) -> (i32, i32) {
    %c0_i32 = arith.constant 0 : i32
    %c0_i32_0 = arith.constant 0 : i32
    %c0_i32_1 = arith.constant 0 : i32
    return %c0_i32, %c0_i32_0 : i32, i32
  }
  func.func @transform_3(%arg0: i32) -> (i32, i32) {
    %c0_i32 = arith.constant 0 : i32
    %c0_i32_0 = arith.constant 0 : i32
    return %arg0, %c0_i32 : i32, i32
  }
}

</mosaic_0001>

<bundles_post_ra>
// kernel: tpu_custom_call.1
= control target key start
LH: loop header
LB: loop body
LE: loop exit
PB: predicated region body
PF: predicated region fallthrough
CT: control target
= control target key end

     0   :  { %vm356_vm0 = vcmask 1040384   ;;  %vm876_vm1 = vcmask 1041409   ;;  %s2221_s0 = inlined_call_operand.vmem [shape: bf16[2,49,2048], index: 0, kind: input, shape index: {}]   ;;  %s2222_s1 = inlined_call_operand.vmem [shape: f32[4,2048], index: 1, kind: input, shape index: {}]   ;;  %s2223_s2 = inlined_call_operand.vmem [shape: f32[1,4], index: 2, kind: input, shape index: {}]   ;;  %s2224_s3 = inlined_call_operand.hbm [shape: f32[2,4], index: 3, kind: output, shape index: {}]  }
   0x1   :  { %v833_v0 = vld [vmem:[%s2222_s1 + $0x8] sm:$0xff]  ;;  %v832_v1 = vld [vmem:[%s2222_s1] sm:$0xff]  ;;  %v835_v27 = vld [vmem:[%s2222_s1 + $0x18] sm:$0xff] }
   0x2   :  { %919 = vst [vmem:[#allocation1 + $0x10] ss:$2 sm:$0xff] %v833_v0  ;;  %v1356_v2 = vld [vmem:[%s2221_s0 + $0x8] sm:$0xff]  ;;  %v836_v32 = vld [vmem:[%s2222_s1 + $0x20] sm:$0xff] }
   0x3   :  { %v1361_v3 = vld [vmem:[%s2221_s0 + $0x48] sm:$0xff]  ;;  %917 = vst [vmem:[#allocation1] ss:$2 sm:$0xff] %v832_v1  ;;  %v129_v8 = vunpack.c.l.bf16 %v1356_v2  ;;  %v130_v28 = vunpack.c.h.bf16 %v1356_v2  ;;  %v1447_v33 = vld [vmem:[%s2221_s0] sm:$0xff] }
   0x4   :  { %v1366_v4 = vld [vmem:[%s2221_s0 + $0x88] sm:$0xff]  ;;  %v145_v9 = vunpack.c.l.bf16 %v1361_v3  ;;  %923 = vst [vmem:[#allocation1 + $0x30] ss:$2 sm:$0xff] %v835_v27  ;;  %v1452_v34 = vld [vmem:[%s2221_s0 + $0x40] sm:$0xff]  ;;  %v146_v35 = vunpack.c.h.bf16 %v1361_v3  ;;  %v127_v41 = vunpack.c.l.bf16 %v1447_v33 }
   0x5   :  { %v1371_v5 = vld [vmem:[%s2221_s0 + $0xc8] sm:$0xff]  ;;  %v161_v10 = vunpack.c.l.bf16 %v1366_v4  ;;  %v1459_v38 = vld [vmem:[%s2221_s0 + $0x80] sm:$0xff]  ;;  %v143_v42 = vunpack.c.l.bf16 %v1452_v34  ;;  %v162_v48 = vunpack.c.h.bf16 %v1366_v4 }
   0x6   :  { %v1376_v6 = vld [vmem:[%s2221_s0 + $0x108] sm:$0xff]  ;;  %v177_v18 = vunpack.c.l.bf16 %v1371_v5  ;;  %v378_v21 = vadd.f32 %v145_v9, %v129_v8  ;;  %v1464_v39 = vld [vmem:[%s2221_s0 + $0xc0] sm:$0xff]  ;;  %v159_v47 = vunpack.c.l.bf16 %v1459_v38  ;;  %v178_v60 = vunpack.c.h.bf16 %v1371_v5 }
   0x7   :  { %v1381_v7 = vld [vmem:[%s2221_s0 + $0x148] sm:$0xff]  ;;  %v193_v24 = vunpack.c.l.bf16 %v1376_v6  ;;  %v1469_v40 = vld [vmem:[%s2221_s0 + $0x100] sm:$0xff]  ;;  %v351_v53 = vadd.f32 %v143_v42, %v127_v41  ;;  %v175_v58 = vunpack.c.l.bf16 %v1464_v39  ;;  %v194_v9 = vunpack.c.h.bf16 %v1376_v6 }
   0x8   :  { %v1389_v11 = vld [vmem:[%s2221_s0 + $0x188] sm:$0x11]  ;;  %v209_v29 = vunpack.c.l.bf16 %v1381_v7  ;;  %v379_v31 = vadd.f32 %v378_v21, %v161_v10  ;;  %v1481_v56 = vld [vmem:[%s2221_s0 + $0x140] sm:$0xff]  ;;  %v191_v59 = vunpack.c.l.bf16 %v1469_v40  ;;  %v210_v21 = vunpack.c.h.bf16 %v1381_v7 }
   0x9   :  { %v1394_v12 = vld [vmem:[%s2221_s0 + $0x1c8] sm:$0xff]  ;;  %v225_v25 = vunpack.c.l.bf16 %v1389_v11  ;;  %v926_v43 = vld.sshfl [vmem:[#allocation1 + $0x10] sm:$0xff pattern:$0x75316420]  ;;  %v1486_v57 = vld [vmem:[%s2221_s0 + $0x180] sm:$0x11]  ;;  %v352_v8 = vadd.f32 %v351_v53, %v159_v47 }
   0xa   :  { %v1399_v13 = vld [vmem:[%s2221_s0 + $0x208] sm:$0xff]  ;;  %v241_v19 = vunpack.c.l.bf16 %v1394_v12  ;;  %v927_v44 = vld.sshfl [vmem:[#allocation1 + $0x18] sm:$0xff pattern:$0x75316420]  ;;  %v380_v46 = vadd.f32 %v379_v31, %v177_v18  ;;  %1015 = vmatpush.xpose.msra.mxu2 %v926_v43  ;;  %v1495_v63 = vld [vmem:[%s2221_s0 + $0x1c0] sm:$0xff]  ;;  %v223_v27 = vunpack.c.l.bf16 %v1486_v57  ;;  %v242_v41 = vunpack.c.h.bf16 %v1394_v12 }
   0xb   :  { %v837_v14 = vld [vmem:[%s2222_s1 + $0x28] sm:$0xff]  ;;  %v257_v20 = vunpack.c.l.bf16 %v1399_v13  ;;  %v924_v49 = vld.sshfl [vmem:[#allocation1] sm:$0xff pattern:$0x75316420]  ;;  %1035 = vmatpush.xpose.msra.mxu3 %v927_v44  ;;  %v383_v51 = vsel %vm356_vm0, %v225_v25, 0.0  ;;  %v834_v31 = vld [vmem:[%s2222_s1 + $0x10] sm:$0xff] }
   0xc   :  { %v1407_v15 = vld [vmem:[%s2221_s0 + $0x248] sm:$0xff]  ;;  %933 = vst [vmem:[#allocation1 + $0x10] ss:$2 sm:$0xff] %v837_v14  ;;  %975 = vmatpush.xpose.msra.mxu0 %v924_v49  ;;  %v381_v54 = vadd.f32 %v380_v46, %v193_v24  ;;  %v1500_v0 = vld [vmem:[%s2221_s0 + $0x200] sm:$0xff]  ;;  %v839_v12 = vld [vmem:[%s2222_s1 + $0x38] sm:$0xff]  ;;  %v357_v53 = vsel %vm356_vm0, %v223_v27, 0.0 }
   0xd   :  { %v1412_v16 = vld [vmem:[%s2221_s0 + $0x288] sm:$0xff]  ;;  %v273_v26 = vunpack.c.l.bf16 %v1407_v15  ;;  %v586_v37 = vadd.f32 %v257_v20, %v241_v19  ;;  %v1505_v1 = vld [vmem:[%s2221_s0 + $0x240] sm:$0xff]  ;;  %v239_v19 = vunpack.c.l.bf16 %v1495_v63  ;;  %v255_v20 = vunpack.c.l.bf16 %v1500_v0  ;;  %v930_v25 = vld.sshfl [vmem:[#allocation1 + $0x30] sm:$0xff pattern:$0x75316420] }
   0xe   :  { %v1417_v17 = vld [vmem:[%s2221_s0 + $0x2c8] sm:$0xff]  ;;  %v289_v30 = vunpack.c.l.bf16 %v1412_v16  ;;  %v382_v10 = vadd.f32 %v381_v54, %v209_v29  ;;  %v1511_v14 = vld [vmem:[%s2221_s0 + $0x280] sm:$0xff]  ;;  %v271_v29 = vunpack.c.l.bf16 %v1505_v1  ;;  %1095 = vmatpush.xpose.msrb.mxu2 %v930_v25  ;;  %921 = vst [vmem:[#allocation1 + $0x20] ss:$2 sm:$0xff] %v834_v31 }
   0xf   :  { %v1425_v22 = vld [vmem:[%s2221_s0 + $0x308] sm:$0xff]  ;;  %v305_v45 = vunpack.c.l.bf16 %v1417_v17  ;;  %v587_v52 = vadd.f32 %v586_v37, %v273_v26  ;;  %v1516_v18 = vld [vmem:[%s2221_s0 + $0x2c0] sm:$0xff]  ;;  %v353_v37 = vadd.f32 %v352_v8, %v175_v58  ;;  %v560_v44 = vadd.f32 %v255_v20, %v239_v19 }
  0x10   :  { %v1430_v23 = vld [vmem:[%s2221_s0 + $0x348] sm:$0x11]  ;;  %v321_v50 = vunpack.c.l.bf16 %v1425_v22  ;;  %v1524_v26 = vld [vmem:[%s2221_s0 + $0x300] sm:$0xff]  ;;  %v303_v47 = vunpack.c.l.bf16 %v1516_v18 }
  0x11   :  { %v337_v36 = vunpack.c.l.bf16 %v1430_v23  ;;  %v925_v55 = vld.sshfl [vmem:[#allocation1 + $0x8] sm:$0xff pattern:$0x75316420]  ;;  %v588_v61 = vadd.f32 %v587_v52, %v289_v30  ;;  %v226_v30 = vunpack.c.h.bf16 %v1389_v11  ;;  %v1537_v43 = vld [vmem:[%s2221_s0 + $0x340] sm:$0x11]  ;;  %v287_v11 = vunpack.c.l.bf16 %v1511_v14 }
  0x12   :  { %932 = vst [vmem:[#allocation1] ss:$2 sm:$0xff] %v836_v32  ;;  %995 = vmatpush.xpose.msra.mxu1 %v925_v55  ;;  %v384_v32 = vadd.f32 %v383_v51, %v382_v10  ;;  %v319_v49 = vunpack.c.l.bf16 %v1524_v26  ;;  %v354_v51 = vadd.f32 %v353_v37, %v191_v59  ;;  %v561_v54 = vadd.f32 %v560_v44, %v271_v29 }
  0x13   :  { %v591_v62 = vsel %vm356_vm0, %v337_v36, 0.0  ;;  %v589_v24 = vadd.f32 %v588_v61, %v305_v45  ;;  %v207_v36 = vunpack.c.l.bf16 %v1481_v56  ;;  %v258_v45 = vunpack.c.h.bf16 %v1399_v13 }
  0x14   :  { %v385_v46 = vrot.slane %v384_v32, 4  ;;  %v274_v55 = vunpack.c.h.bf16 %v1407_v15  ;;  %v335_v58 = vunpack.c.l.bf16 %v1537_v43  ;;  %v391_v59 = vadd.f32 %v146_v35, %v130_v28 }
  0x15   :  { %v590_v42 = vadd.f32 %v589_v24, %v321_v50  ;;  %v931_v50 = vld.sshfl [vmem:[#allocation1 + $0x38] sm:$0xff pattern:$0x75316420]  ;;  %v355_v61 = vadd.f32 %v354_v51, %v207_v36  ;;  %v562_v10 = vadd.f32 %v561_v54, %v287_v11  ;;  %v599_v19 = vadd.f32 %v258_v45, %v242_v41 }
  0x16   :  { %935 = vst [vmem:[#allocation1 + $0x30] ss:$2 sm:$0xff] %v839_v12  ;;  %1115 = vmatpush.xpose.msrb.mxu3 %v931_v50  ;;  %v386_v13 = vadd.f32 %v385_v46, %v384_v32  ;;  %v306_v15 = vunpack.c.h.bf16 %v1417_v17  ;;  %v392_v25 = vadd.f32 %v391_v59, %v162_v48  ;;  %v338_v31 = vunpack.c.h.bf16 %v1430_v23  ;;  %v928_v32 = vld.sshfl [vmem:[#allocation1 + $0x20] sm:$0xff pattern:$0x75316420] }
  0x17   :  { %v592_v52 = vadd.f32 %v591_v62, %v590_v42  ;;  %v290_v62 = vunpack.c.h.bf16 %v1412_v16  ;;  %v358_v24 = vadd.f32 %v357_v53, %v355_v61  ;;  %v563_v29 = vadd.f32 %v562_v10, %v303_v47  ;;  %1055 = vmatpush.xpose.msrb.mxu0 %v928_v32 }
  0x18   :  { %v387_v20 = vrot.slane %v386_v13, 2  ;;  %v600_v2 = vadd.f32 %v599_v19, %v274_v55  ;;  %v565_v35 = vsel %vm356_vm0, %v335_v58, 0.0  ;;  %v393_v16 = vadd.f32 %v392_v25, %v178_v60 }
  0x19   :  { %v593_v8 = vrot.slane %v592_v52, 4  ;;  %v359_v28 = vrot.slane %v358_v24, 4  ;;  %v564_v37 = vadd.f32 %v563_v29, %v319_v49  ;;  %v322_v17 = vunpack.c.h.bf16 %v1425_v22 }
  0x1a   :  { %v388_v3 = vadd.f32 %v387_v20, %v386_v13  ;;  %v601_v4 = vadd.f32 %v600_v2, %v290_v62  ;;  %v394_v23 = vadd.f32 %v393_v16, %v194_v9  ;;  %v396_v42 = vsel %vm356_vm0, %v226_v30, 0.0 }
  0x1b   :  { %v594_v27 = vadd.f32 %v593_v8, %v592_v52  ;;  %v360_v41 = vadd.f32 %v359_v28, %v358_v24  ;;  %v566_v44 = vadd.f32 %v565_v35, %v564_v37  ;;  %v604_v5 = vsel %vm356_vm0, %v338_v31, 0.0 }
  0x1c   :  { %v389_v48 = vrot.slane %v388_v3, 1  ;;  %v602_v45 = vadd.f32 %v601_v4, %v306_v15 }
  0x1d   :  { %v595_v36 = vrot.slane %v594_v27, 2 }
  0x1f   :  { %v596_v11 = vadd.f32 %v595_v36, %v594_v27 }
  0x20   :  { %8 = vsyncpa [#allocation3], 0  ;;  %v390_v60 = vadd.f32 %v389_v48, %v388_v3  ;;  %v361_v46 = vrot.slane %v360_v41, 2  ;;  %v395_v22 = vadd.f32 %v394_v23, %v210_v21  ;;  %v128_v47 = vunpack.c.h.bf16 %v1447_v33  ;;  %v929_v20 = vld.sshfl [vmem:[#allocation1 + $0x28] sm:$0xff pattern:$0x75316420] }
  0x21   :  { %v597_v49 = vrot.slane %v596_v11, 1  ;;  %v567_v51 = vrot.slane %v566_v44, 4  ;;  %v603_v12 = vadd.f32 %v602_v45, %v322_v17  ;;  %v144_v6 = vunpack.c.h.bf16 %v1452_v34  ;;  %1075 = vmatpush.xpose.msrb.mxu1 %v929_v20  ;;  %v1659_v20 = vld [vmem:[%s2221_s0 + $0x2d8] sm:$0xff]  ;;  %s1289_s6 = sshll.u32 %s2224_s3, 4  ;;  %s1290_s6 = int_to_ptr.hbm [resolvable:$true] %s1289_s6 }
  0x22   :  { %v770_v9 = vmul.f32 0.020408163, %v390_v60  ;;  %v362_v30 = vadd.f32 %v361_v46, %v360_v41  ;;  %v397_v50 = vadd.f32 %v396_v42, %v395_v22  ;;  %v160_v52 = vunpack.c.h.bf16 %v1459_v38  ;;  %v1611_v46 = vld [vmem:[%s2221_s0 + $0x98] sm:$0xff] }
  0x23   :  { %v598_v53 = vadd.f32 %v597_v49, %v596_v11  ;;  %v568_v54 = vadd.f32 %v567_v51, %v566_v44  ;;  %v605_v55 = vadd.f32 %v604_v5, %v603_v12  ;;  %v176_v13 = vunpack.c.h.bf16 %v1464_v39  ;;  %v838_v39 = vld [vmem:[%s2222_s1 + $0x30] sm:$0xff]  ;;  %v1600_v44 = vld [vmem:[%s2221_s0 + $0x1d8] sm:$0xff] }
  0x24   :  { %v363_v58 = vrot.slane %v362_v30, 1  ;;  %v398_v7 = vrot.slane %v397_v50, 4  ;;  %v240_v21 = vunpack.c.h.bf16 %v1495_v63  ;;  %v256_v33 = vunpack.c.h.bf16 %v1500_v0  ;;  %934 = vst [vmem:[#allocation1 + $0x20] ss:$2 sm:$0xff] %v838_v39  ;;  %v1617_v12 = vld [vmem:[%s2221_s0 + $0xd8] sm:$0xff] }
  0x25   :  { %v786_v61 = vmul.f32 0.020408163, %v598_v53  ;;  %v802_v59 = vmax.f32 %v770_v9, 0.0  ;;  %v569_v8 = vrot.slane %v568_v54, 2  ;;  %v606_v34 = vrot.slane %v605_v55, 4 }
  0x26   :  { %v364_v10 = vadd.f32 %v363_v58, %v362_v30  ;;  %v399_v62 = vadd.f32 %v398_v7, %v397_v50  ;;  %v192_v19 = vunpack.c.h.bf16 %v1469_v40  ;;  %v224_v38 = vunpack.c.h.bf16 %v1486_v57  ;;  %v1633_v53 = vld [vmem:[%s2221_s0 + $0x358] sm:$0x11] }
  0x27   :  { %v818_v24 = vmax.f32 %v786_v61, 0.0  ;;  %v570_v15 = vadd.f32 %v569_v8, %v568_v54  ;;  %v607_v63 = vadd.f32 %v606_v34, %v605_v55  ;;  %v272_v0 = vunpack.c.h.bf16 %v1505_v1  ;;  %v938_v61 = vld.sshfl [vmem:[#allocation1 + $0x10] sm:$0xff pattern:$0x75316420]  ;;  %v1647_v34 = vld [vmem:[%s2221_s0 + $0x118] sm:$0xff] }
  0x28   :  { %v768_v25 = vmul.f32 0.020408163, %v364_v10  ;;  %v400_v27 = vrot.slane %v399_v62, 2  ;;  %v288_v29 = vunpack.c.h.bf16 %v1511_v14  ;;  %v365_v31 = vadd.f32 %v144_v6, %v128_v47  ;;  %v1588_v14 = vld [vmem:[%s2221_s0 + $0x18] sm:$0xff] }
  0x29   :  { %v879_v40 = vsel %vm876_vm1, %v818_v24, %v802_v59  ;;  %v571_v57 = vrot.slane %v570_v15, 1  ;;  %v608_v2 = vrot.slane %v607_v63, 2  ;;  %v573_v32 = vadd.f32 %v256_v33, %v240_v21  ;;  %v1622_v6 = vld [vmem:[%s2221_s0 + $0x258] sm:$0xff] }
  0x2a   :  { %1016 = vmatmul.f32.vlgmr.msra.gmra.mxu2 %v879_v40  ;;  %v401_v3 = vadd.f32 %v400_v27, %v399_v62  ;;  %v208_v28 = vunpack.c.h.bf16 %v1481_v56  ;;  %v336_v35 = vunpack.c.h.bf16 %v1537_v43  ;;  %v366_v16 = vadd.f32 %v365_v31, %v160_v52  ;;  %v1595_v56 = vld [vmem:[%s2221_s0 + $0x58] sm:$0xff] }
  0x2b   :  { %v572_v1 = vadd.f32 %v571_v57, %v570_v15  ;;  %v609_v36 = vadd.f32 %v608_v2, %v607_v63  ;;  %v304_v37 = vunpack.c.h.bf16 %v1516_v18  ;;  %v574_v17 = vadd.f32 %v573_v32, %v272_v0  ;;  %v1628_v52 = vld [vmem:[%s2221_s0 + $0x198] sm:$0x11]  ;;  %1175 = vmatpush.xpose.msra.mxu2 %v938_v61  ;;  %v1675_v32 = vld [vmem:[%s2221_s0 + $0x10] sm:$0xff] }
  0x2c   :  { %v402_v4 = vrot.slane %v401_v3, 1  ;;  %v320_v48 = vunpack.c.h.bf16 %v1524_v26  ;;  %v367_v41 = vadd.f32 %v366_v16, %v176_v13  ;;  %v370_v23 = vsel %vm356_vm0, %v224_v38, 0.0  ;;  %v1605_v26 = vld [vmem:[%s2221_s0 + $0x218] sm:$0xff] }
  0x2d   :  { %v784_v43 = vmul.f32 0.020408163, %v572_v1  ;;  %v800_v42 = vmax.f32 %v768_v25, 0.0  ;;  %v610_v18 = vrot.slane %v609_v36, 1  ;;  %v575_v11 = vadd.f32 %v574_v17, %v288_v29  ;;  %v1641_v21 = vld [vmem:[%s2221_s0 + $0x298] sm:$0xff]  ;;  %v1681_v1 = vld [vmem:[%s2221_s0 + $0x50] sm:$0xff] }
  0x2e   :  { %v403_v45 = vadd.f32 %v402_v4, %v401_v3  ;;  %v368_v5 = vadd.f32 %v367_v41, %v192_v19  ;;  %v578_v60 = vsel %vm356_vm0, %v336_v35, 0.0  ;;  %v133_v22 = vunpack.c.l.bf16 %v1588_v14  ;;  %v1652_v10 = vld [vmem:[%s2221_s0 + $0x158] sm:$0xff] }
  0x2f   :  { %v816_v47 = vmax.f32 %v784_v43, 0.0  ;;  %v611_v49 = vadd.f32 %v610_v18, %v609_v36  ;;  %v576_v51 = vadd.f32 %v575_v11, %v304_v37  ;;  %v149_v9 = vunpack.c.l.bf16 %v1595_v56  ;;  %v1666_v0 = vld [vmem:[%s2221_s0 + $0x318] sm:$0xff]  ;;  %v1686_v36 = vld [vmem:[%s2221_s0 + $0x1d0] sm:$0xff] }
  0x30   :  { %v771_v30 = vmul.f32 0.020408163, %v403_v45  ;;  %v369_v50 = vadd.f32 %v368_v5, %v208_v28  ;;  %v245_v54 = vunpack.c.l.bf16 %v1600_v44  ;;  %v261_v55 = vunpack.c.l.bf16 %v1605_v26  ;;  %v1691_v37 = vld [vmem:[%s2221_s0 + $0x210] sm:$0xff] }
  0x31   :  { %v877_v13 = vsel %vm876_vm1, %v816_v47, %v800_v42  ;;  %v787_v58 = vmul.f32 0.020408163, %v611_v49  ;;  %v577_v7 = vadd.f32 %v576_v51, %v320_v48  ;;  %v165_v33 = vunpack.c.l.bf16 %v1611_v46  ;;  %v1704_v11 = vld [vmem:[%s2221_s0 + $0xd0] sm:$0xff] }
  0x32   :  { %976 = vmatmul.f32.vlgmr.msra.gmra.mxu0 %v877_v13  ;;  %v803_v59 = vmax.f32 %v771_v30, 0.0  ;;  %v371_v8 = vadd.f32 %v370_v23, %v369_v50  ;;  %v181_v62 = vunpack.c.l.bf16 %v1617_v12  ;;  %v277_v19 = vunpack.c.l.bf16 %v1622_v6  ;;  %v1699_v23 = vld [vmem:[%s2221_s0 + $0x90] sm:$0xff] }
  0x33   :  { %v819_v38 = vmax.f32 %v787_v58, 0.0  ;;  %v579_v39 = vadd.f32 %v578_v60, %v577_v7  ;;  %v229_v24 = vunpack.c.l.bf16 %v1628_v52  ;;  %v341_v15 = vunpack.c.l.bf16 %v1633_v53  ;;  %v1709_v45 = vld [vmem:[%s2221_s0 + $0x110] sm:$0xff] }
  0x34   :  { %v372_v63 = vrot.slane %v371_v8, 4  ;;  %v293_v25 = vunpack.c.l.bf16 %v1641_v21  ;;  %v430_v27 = vadd.f32 %v149_v9, %v133_v22  ;;  %v638_v29 = vadd.f32 %v261_v55, %v245_v54  ;;  %v1714_v5 = vld [vmem:[%s2221_s0 + $0x250] sm:$0xff] }
  0x35   :  { %v880_v31 = vsel %vm876_vm1, %v819_v38, %v803_v59  ;;  %v580_v40 = vrot.slane %v579_v39, 4  ;;  %v197_v57 = vunpack.c.l.bf16 %v1647_v34  ;;  %v213_v2 = vunpack.c.l.bf16 %v1652_v10  ;;  %v1720_v47 = vld [vmem:[%s2221_s0 + $0x190] sm:$0x11] }
  0x36   :  { %1036 = vmatmul.f32.vlgmr.msra.gmra.mxu3 %v880_v31  ;;  %v373_v3 = vadd.f32 %v372_v63, %v371_v8  ;;  %v309_v28 = vunpack.c.l.bf16 %v1659_v20  ;;  %v431_v35 = vadd.f32 %v430_v27, %v165_v33  ;;  %v639_v16 = vadd.f32 %v638_v29, %v277_v19  ;;  %v1728_v55 = vld [vmem:[%s2221_s0 + $0x290] sm:$0xff] }
  0x37   :  { %v581_v17 = vadd.f32 %v580_v40, %v579_v39  ;;  %v325_v4 = vunpack.c.l.bf16 %v1666_v0  ;;  %v435_v48 = vsel %vm356_vm0, %v229_v24, 0.0  ;;  %v643_v41 = vsel %vm356_vm0, %v341_v15, 0.0  ;;  %v1734_v7 = vld [vmem:[%s2221_s0 + $0x2d0] sm:$0xff] }
  0x38   :  { %v374_v43 = vrot.slane %v373_v3, 2  ;;  %v432_v42 = vadd.f32 %v431_v35, %v181_v62  ;;  %v640_v18 = vadd.f32 %v639_v16, %v293_v25  ;;  %v131_v60 = vunpack.c.l.bf16 %v1675_v32  ;;  %v1742_v38 = vld [vmem:[%s2221_s0 + $0x350] sm:$0x11] }
  0x39   :  { %v582_v22 = vrot.slane %v581_v17, 2  ;;  %v147_v49 = vunpack.c.l.bf16 %v1681_v1  ;;  %v243_v51 = vunpack.c.l.bf16 %v1686_v36  ;;  %v259_v9 = vunpack.c.l.bf16 %v1691_v37  ;;  %v1748_v15 = vld [vmem:[%s2221_s0 + $0x150] sm:$0xff] }
  0x3a   :  { %v375_v30 = vadd.f32 %v374_v43, %v373_v3  ;;  %v433_v50 = vadd.f32 %v432_v42, %v197_v57  ;;  %v641_v54 = vadd.f32 %v640_v18, %v309_v28  ;;  %v163_v13 = vunpack.c.l.bf16 %v1699_v23  ;;  %v1754_v57 = vld [vmem:[%s2221_s0 + $0x310] sm:$0xff] }
  0x3b   :  { %v583_v58 = vadd.f32 %v582_v22, %v581_v17  ;;  %v179_v33 = vunpack.c.l.bf16 %v1704_v11  ;;  %v195_v61 = vunpack.c.l.bf16 %v1709_v45  ;;  %v275_v59 = vunpack.c.l.bf16 %v1714_v5 }
  0x3c   :  { %v376_v8 = vrot.slane %v375_v30, 1  ;;  %v434_v62 = vadd.f32 %v433_v50, %v213_v2  ;;  %v642_v19 = vadd.f32 %v641_v54, %v325_v4  ;;  %v227_v39 = vunpack.c.l.bf16 %v1720_v47 }
  0x3d   :  { %v584_v24 = vrot.slane %v583_v58, 1  ;;  %v291_v63 = vunpack.c.l.bf16 %v1728_v55  ;;  %v404_v25 = vadd.f32 %v147_v49, %v131_v60  ;;  %v612_v27 = vadd.f32 %v259_v9, %v243_v51 }
  0x3e   :  { %v377_v29 = vadd.f32 %v376_v8, %v375_v30  ;;  %v436_v31 = vadd.f32 %v435_v48, %v434_v62  ;;  %v644_v40 = vadd.f32 %v643_v41, %v642_v19  ;;  %v307_v2 = vunpack.c.l.bf16 %v1734_v7 }
  0x3f   :  { %v585_v3 = vadd.f32 %v584_v24, %v583_v58  ;;  %v339_v28 = vunpack.c.l.bf16 %v1742_v38  ;;  %v405_v35 = vadd.f32 %v404_v25, %v163_v13  ;;  %v613_v16 = vadd.f32 %v612_v27, %v275_v59 }
  0x40   :  { %v769_v17 = vmul.f32 0.020408163, %v377_v29  ;;  %v437_v4 = vrot.slane %v436_v31, 4  ;;  %v645_v43 = vrot.slane %v644_v40, 4  ;;  %v211_v42 = vunpack.c.l.bf16 %v1748_v15 }
  0x41   :  { %v785_v18 = vmul.f32 0.020408163, %v585_v3  ;;  %v323_v48 = vunpack.c.l.bf16 %v1754_v57  ;;  %v406_v41 = vadd.f32 %v405_v35, %v179_v33  ;;  %v614_v60 = vadd.f32 %v613_v16, %v291_v63 }
  0x42   :  { %v801_v22 = vmax.f32 %v769_v17, 0.0  ;;  %v438_v49 = vadd.f32 %v437_v4, %v436_v31  ;;  %v646_v51 = vadd.f32 %v645_v43, %v644_v40  ;;  %v409_v9 = vsel %vm356_vm0, %v227_v39, 0.0 }
  0x43   :  { %v817_v30 = vmax.f32 %v785_v18, 0.0  ;;  %v407_v50 = vadd.f32 %v406_v41, %v195_v61  ;;  %v615_v54 = vadd.f32 %v614_v60, %v307_v2  ;;  %v617_v13 = vsel %vm356_vm0, %v339_v28, 0.0  ;;  %v939_v2 = vld.sshfl [vmem:[#allocation1 + $0x18] sm:$0xff pattern:$0x75316420] }
  0x44   :  { %v439_v58 = vrot.slane %v438_v49, 2  ;;  %v647_v59 = vrot.slane %v646_v51, 2  ;;  %v134_v8 = vunpack.c.h.bf16 %v1588_v14  ;;  %v150_v62 = vunpack.c.h.bf16 %v1595_v56  ;;  %v936_v56 = vld.sshfl [vmem:[#allocation1] sm:$0xff pattern:$0x75316420]  ;;  %1195 = vmatpush.xpose.msra.mxu3 %v939_v2 }
  0x45   :  { %v878_v19 = vsel %vm876_vm1, %v817_v30, %v801_v22  ;;  %v408_v33 = vadd.f32 %v407_v50, %v211_v42  ;;  %v616_v24 = vadd.f32 %v615_v54, %v323_v48  ;;  %v166_v63 = vunpack.c.h.bf16 %v1611_v46  ;;  %1135 = vmatpush.xpose.msra.mxu0 %v936_v56 }
  0x46   :  { %996 = vmatmul.f32.vlgmr.msra.gmra.mxu1 %v878_v19  ;;  %v440_v25 = vadd.f32 %v439_v58, %v438_v49  ;;  %v648_v39 = vadd.f32 %v647_v59, %v646_v51  ;;  %v246_v61 = vunpack.c.h.bf16 %v1600_v44  ;;  %v262_v27 = vunpack.c.h.bf16 %v1605_v26 }
  0x47   :  { %v410_v29 = vadd.f32 %v409_v9, %v408_v33  ;;  %v618_v31 = vadd.f32 %v617_v13, %v616_v24  ;;  %v182_v40 = vunpack.c.h.bf16 %v1617_v12  ;;  %v198_v14 = vunpack.c.h.bf16 %v1647_v34 }
  0x48   :  { %v441_v3 = vrot.slane %v440_v25, 1  ;;  %v649_v28 = vrot.slane %v648_v39, 1  ;;  %v214_v35 = vunpack.c.h.bf16 %v1652_v10  ;;  %v278_v46 = vunpack.c.h.bf16 %v1622_v6 }
  0x49   :  { %v411_v16 = vrot.slane %v410_v29, 4  ;;  %v619_v44 = vrot.slane %v618_v31, 4  ;;  %v230_v26 = vunpack.c.h.bf16 %v1628_v52  ;;  %v443_v17 = vadd.f32 %v150_v62, %v134_v8 }
  0x4a   :  { %v442_v4 = vadd.f32 %v441_v3, %v440_v25  ;;  %v650_v43 = vadd.f32 %v649_v28, %v648_v39  ;;  %v294_v12 = vunpack.c.h.bf16 %v1641_v21  ;;  %v651_v34 = vadd.f32 %v262_v27, %v246_v61 }
  0x4b   :  { %v412_v42 = vadd.f32 %v411_v16, %v410_v29  ;;  %v620_v18 = vadd.f32 %v619_v44, %v618_v31  ;;  %v342_v48 = vunpack.c.h.bf16 %v1633_v53  ;;  %v444_v41 = vadd.f32 %v443_v17, %v166_v63 }
  0x4c   :  { %v774_v10 = vmul.f32 0.020408163, %v442_v4  ;;  %v790_v60 = vmul.f32 0.020408163, %v650_v43  ;;  %v310_v6 = vunpack.c.h.bf16 %v1659_v20  ;;  %v652_v22 = vadd.f32 %v651_v34, %v278_v46 }
  0x4d   :  { %v413_v49 = vrot.slane %v412_v42, 2  ;;  %v621_v51 = vrot.slane %v620_v18, 2  ;;  %v326_v52 = vunpack.c.h.bf16 %v1666_v0  ;;  %v445_v9 = vadd.f32 %v444_v41, %v182_v40 }
  0x4e   :  { %v806_v30 = vmax.f32 %v774_v10, 0.0  ;;  %v822_v50 = vmax.f32 %v790_v60, 0.0  ;;  %v448_v21 = vsel %vm356_vm0, %v230_v26, 0.0  ;;  %v653_v54 = vadd.f32 %v652_v22, %v294_v12  ;;  %v1796_v12 = vld [vmem:[%s2221_s0 + $0x28] sm:$0xff] }
  0x4f   :  { %v414_v13 = vadd.f32 %v413_v49, %v412_v42  ;;  %v622_v58 = vadd.f32 %v621_v51, %v620_v18  ;;  %v446_v59 = vadd.f32 %v445_v9, %v198_v14  ;;  %v656_v53 = vsel %vm356_vm0, %v342_v48, 0.0  ;;  %v937_v14 = vld.sshfl [vmem:[#allocation1 + $0x8] sm:$0xff pattern:$0x75316420] }
  0x50   :  { %v883_v8 = vsel %vm876_vm1, %v822_v50, %v806_v30  ;;  %v654_v62 = vadd.f32 %v653_v54, %v310_v6  ;;  %v132_v20 = vunpack.c.h.bf16 %v1675_v32  ;;  %v148_v19 = vunpack.c.h.bf16 %v1681_v1  ;;  %1155 = vmatpush.xpose.msra.mxu1 %v937_v14  ;;  %v1814_v18 = vld [vmem:[%s2221_s0 + $0x228] sm:$0xff] }
  0x51   :  { %1096 = vmatmul.f32.vlgmr.msrb.gmra.mxu2 %v883_v8  ;;  %v415_v0 = vrot.slane %v414_v13, 1  ;;  %v623_v33 = vrot.slane %v622_v58, 1  ;;  %v447_v24 = vadd.f32 %v446_v59, %v214_v35  ;;  %v164_v63 = vunpack.c.h.bf16 %v1699_v23  ;;  %v1820_v6 = vld [vmem:[%s2221_s0 + $0xa8] sm:$0xff] }
  0x52   :  { %v655_v25 = vadd.f32 %v654_v62, %v326_v52  ;;  %v180_v39 = vunpack.c.h.bf16 %v1704_v11  ;;  %v244_v61 = vunpack.c.h.bf16 %v1686_v36  ;;  %v260_v27 = vunpack.c.h.bf16 %v1691_v37  ;;  %v1830_v22 = vld [vmem:[%s2221_s0 + $0x128] sm:$0xff] }
  0x53   :  { %v416_v29 = vadd.f32 %v415_v0, %v414_v13  ;;  %v624_v31 = vadd.f32 %v623_v33, %v622_v58  ;;  %v449_v40 = vadd.f32 %v448_v21, %v447_v24  ;;  %v196_v32 = vunpack.c.h.bf16 %v1709_v45  ;;  %v1835_v51 = vld [vmem:[%s2221_s0 + $0x268] sm:$0xff] }
  0x54   :  { %v657_v1 = vadd.f32 %v656_v53, %v655_v25  ;;  %v228_v56 = vunpack.c.h.bf16 %v1720_v47  ;;  %v276_v2 = vunpack.c.h.bf16 %v1714_v5  ;;  %v417_v3 = vadd.f32 %v148_v19, %v132_v20  ;;  %v1843_v13 = vld [vmem:[%s2221_s0 + $0x1a8] sm:$0x11]  ;;  %v942_v19 = vld.sshfl [vmem:[#allocation1 + $0x30] sm:$0xff pattern:$0x75316420] }
  0x55   :  { %v772_v23 = vmul.f32 0.020408163, %v416_v29  ;;  %v788_v28 = vmul.f32 0.020408163, %v624_v31  ;;  %v450_v11 = vrot.slane %v449_v40, 4  ;;  %v292_v36 = vunpack.c.h.bf16 %v1728_v55  ;;  %v1801_v55 = vld [vmem:[%s2221_s0 + $0x68] sm:$0xff]  ;;  %1255 = vmatpush.xpose.msrb.mxu2 %v942_v19 }
  0x56   :  { %v658_v35 = vrot.slane %v657_v1, 4  ;;  %v340_v37 = vunpack.c.h.bf16 %v1742_v38  ;;  %v418_v46 = vadd.f32 %v417_v3, %v164_v63  ;;  %v625_v16 = vadd.f32 %v260_v27, %v244_v61  ;;  %v1806_v38 = vld [vmem:[%s2221_s0 + $0x1e8] sm:$0xff] }
  0x57   :  { %v804_v44 = vmax.f32 %v772_v23, 0.0  ;;  %v820_v45 = vmax.f32 %v788_v28, 0.0  ;;  %v451_v26 = vadd.f32 %v450_v11, %v449_v40  ;;  %v212_v17 = vunpack.c.h.bf16 %v1748_v15  ;;  %v1848_v58 = vld [vmem:[%s2221_s0 + $0x2a8] sm:$0xff] }
  0x58   :  { %v659_v47 = vadd.f32 %v658_v35, %v657_v1  ;;  %v308_v5 = vunpack.c.h.bf16 %v1734_v7  ;;  %v419_v4 = vadd.f32 %v418_v46, %v180_v39  ;;  %v626_v43 = vadd.f32 %v625_v16, %v276_v2  ;;  %v1857_v63 = vld [vmem:[%s2221_s0 + $0x2e8] sm:$0xff]  ;;  %v1882_v16 = vld [vmem:[%s2221_s0 + $0x20] sm:$0xff] }
  0x59   :  { %v881_v15 = vsel %vm876_vm1, %v820_v45, %v804_v44  ;;  %v452_v7 = vrot.slane %v451_v26, 2  ;;  %v324_v34 = vunpack.c.h.bf16 %v1754_v57  ;;  %v422_v42 = vsel %vm356_vm0, %v228_v56, 0.0  ;;  %v1825_v57 = vld [vmem:[%s2221_s0 + $0xe8] sm:$0xff] }
  0x5a   :  { %1056 = vmatmul.f32.vlgmr.msrb.gmra.mxu0 %v881_v15  ;;  %v660_v48 = vrot.slane %v659_v47, 2  ;;  %v420_v41 = vadd.f32 %v419_v4, %v196_v32  ;;  %v627_v10 = vadd.f32 %v626_v43, %v292_v36  ;;  %v630_v60 = vsel %vm356_vm0, %v340_v37, 0.0  ;;  %v1862_v25 = vld [vmem:[%s2221_s0 + $0x368] sm:$0x11]  ;;  %v1889_v15 = vld [vmem:[%s2221_s0 + $0x60] sm:$0xff] }
  0x5b   :  { %v453_v49 = vadd.f32 %v452_v7, %v451_v26  ;;  %v137_v52 = vunpack.c.l.bf16 %v1796_v12  ;;  %v153_v9 = vunpack.c.l.bf16 %v1801_v55  ;;  %v249_v30 = vunpack.c.l.bf16 %v1806_v38  ;;  %v1870_v1 = vld [vmem:[%s2221_s0 + $0x168] sm:$0xff]  ;;  %v1894_v7 = vld [vmem:[%s2221_s0 + $0x1e0] sm:$0xff] }
  0x5c   :  { %v661_v50 = vadd.f32 %v660_v48, %v659_v47  ;;  %v421_v21 = vadd.f32 %v420_v41, %v212_v17  ;;  %v628_v54 = vadd.f32 %v627_v10, %v308_v5  ;;  %v265_v59 = vunpack.c.l.bf16 %v1814_v18  ;;  %v1875_v56 = vld [vmem:[%s2221_s0 + $0x328] sm:$0xff]  ;;  %v1906_v10 = vld [vmem:[%s2221_s0 + $0xa0] sm:$0xff] }
  0x5d   :  { %v454_v53 = vrot.slane %v453_v49, 1  ;;  %v169_v8 = vunpack.c.l.bf16 %v1820_v6  ;;  %v185_v62 = vunpack.c.l.bf16 %v1825_v57  ;;  %v201_v20 = vunpack.c.l.bf16 %v1830_v22 }
  0x5e   :  { %v662_v0 = vrot.slane %v661_v50, 1  ;;  %v423_v33 = vadd.f32 %v422_v42, %v421_v21  ;;  %v629_v24 = vadd.f32 %v628_v54, %v324_v34  ;;  %v281_v39 = vunpack.c.l.bf16 %v1835_v51  ;;  %v1899_v34 = vld [vmem:[%s2221_s0 + $0x220] sm:$0xff] }
  0x5f   :  { %v455_v61 = vadd.f32 %v454_v53, %v453_v49  ;;  %v233_v27 = vunpack.c.l.bf16 %v1843_v13  ;;  %v297_v29 = vunpack.c.l.bf16 %v1848_v58  ;;  %v482_v31 = vadd.f32 %v153_v9, %v137_v52  ;;  %v1918_v21 = vld [vmem:[%s2221_s0 + $0x120] sm:$0xff] }
  0x60   :  { %v663_v40 = vadd.f32 %v662_v0, %v661_v50  ;;  %v424_v32 = vrot.slane %v423_v33, 4  ;;  %v631_v14 = vadd.f32 %v630_v60, %v629_v24  ;;  %v690_v2 = vadd.f32 %v265_v59, %v249_v30  ;;  %v1913_v50 = vld [vmem:[%s2221_s0 + $0xe0] sm:$0xff] }
  0x61   :  { %v775_v3 = vmul.f32 0.020408163, %v455_v61  ;;  %v313_v23 = vunpack.c.l.bf16 %v1857_v63  ;;  %v345_v28 = vunpack.c.l.bf16 %v1862_v25  ;;  %v483_v11 = vadd.f32 %v482_v31, %v169_v8  ;;  %v1923_v54 = vld [vmem:[%s2221_s0 + $0x260] sm:$0xff] }
  0x62   :  { %v791_v36 = vmul.f32 0.020408163, %v663_v40  ;;  %v425_v35 = vadd.f32 %v424_v32, %v423_v33  ;;  %v632_v37 = vrot.slane %v631_v14, 4  ;;  %v691_v46 = vadd.f32 %v690_v2, %v281_v39  ;;  %v1928_v53 = vld [vmem:[%s2221_s0 + $0x1a0] sm:$0x11] }
  0x63   :  { %v807_v44 = vmax.f32 %v775_v3, 0.0  ;;  %v217_v45 = vunpack.c.l.bf16 %v1870_v1  ;;  %v329_v26 = vunpack.c.l.bf16 %v1875_v56  ;;  %v484_v17 = vadd.f32 %v483_v11, %v185_v62  ;;  %v1936_v24 = vld [vmem:[%s2221_s0 + $0x2a0] sm:$0xff] }
  0x64   :  { %v823_v47 = vmax.f32 %v791_v36, 0.0  ;;  %v426_v5 = vrot.slane %v425_v35, 2  ;;  %v633_v4 = vadd.f32 %v632_v37, %v631_v14  ;;  %v692_v43 = vadd.f32 %v691_v46, %v297_v29  ;;  %v1950_v3 = vld [vmem:[%s2221_s0 + $0x2e0] sm:$0xff] }
  0x65   :  { %v485_v42 = vadd.f32 %v484_v17, %v201_v20  ;;  %v487_v48 = vsel %vm356_vm0, %v233_v27, 0.0  ;;  %v695_v41 = vsel %vm356_vm0, %v345_v28, 0.0  ;;  %v135_v60 = vunpack.c.l.bf16 %v1882_v16  ;;  %v1942_v27 = vld [vmem:[%s2221_s0 + $0x360] sm:$0x11] }
  0x66   :  { %v884_v49 = vsel %vm876_vm1, %v823_v47, %v807_v44  ;;  %v427_v52 = vadd.f32 %v426_v5, %v425_v35  ;;  %v634_v9 = vrot.slane %v633_v4, 2  ;;  %v693_v30 = vadd.f32 %v692_v43, %v313_v23  ;;  %v1956_v11 = vld [vmem:[%s2221_s0 + $0x160] sm:$0xff] }
  0x67   :  { %1116 = vmatmul.f32.vlgmr.msrb.gmra.mxu3 %v884_v49  ;;  %v486_v59 = vadd.f32 %v485_v42, %v217_v45  ;;  %v151_v8 = vunpack.c.l.bf16 %v1889_v15  ;;  %v247_v62 = vunpack.c.l.bf16 %v1894_v7  ;;  %v263_v20 = vunpack.c.l.bf16 %v1899_v34 }
  0x68   :  { %v428_v19 = vrot.slane %v427_v52, 1  ;;  %v635_v0 = vadd.f32 %v634_v9, %v633_v4  ;;  %v694_v33 = vadd.f32 %v693_v30, %v329_v26  ;;  %v167_v39 = vunpack.c.l.bf16 %v1906_v10  ;;  %v1962_v26 = vld [vmem:[%s2221_s0 + $0x320] sm:$0xff] }
  0x69   :  { %v488_v61 = vadd.f32 %v487_v48, %v486_v59  ;;  %v183_v29 = vunpack.c.l.bf16 %v1913_v50  ;;  %v199_v31 = vunpack.c.l.bf16 %v1918_v21  ;;  %v279_v40 = vunpack.c.l.bf16 %v1923_v54 }
  0x6a   :  { %v429_v32 = vadd.f32 %v428_v19, %v427_v52  ;;  %v636_v14 = vrot.slane %v635_v0, 1  ;;  %v696_v2 = vadd.f32 %v695_v41, %v694_v33  ;;  %v231_v23 = vunpack.c.l.bf16 %v1928_v53 }
  0x6b   :  { %v489_v28 = vrot.slane %v488_v61, 4  ;;  %v295_v36 = vunpack.c.l.bf16 %v1936_v24  ;;  %v456_v35 = vadd.f32 %v151_v8, %v135_v60  ;;  %v664_v37 = vadd.f32 %v263_v20, %v247_v62 }
  0x6c   :  { %v637_v46 = vadd.f32 %v636_v14, %v635_v0  ;;  %v773_v44 = vmul.f32 0.020408163, %v429_v32  ;;  %v697_v45 = vrot.slane %v696_v2, 4  ;;  %v343_v17 = vunpack.c.l.bf16 %v1942_v27 }
  0x6d   :  { %v490_v47 = vadd.f32 %v489_v28, %v488_v61  ;;  %v311_v5 = vunpack.c.l.bf16 %v1950_v3  ;;  %v457_v4 = vadd.f32 %v456_v35, %v167_v39  ;;  %v665_v43 = vadd.f32 %v664_v37, %v279_v40  ;;  %v940_v37 = vld.sshfl [vmem:[#allocation1 + $0x20] sm:$0xff pattern:$0x75316420] }
  0x6e   :  { %v789_v42 = vmul.f32 0.020408163, %v637_v46  ;;  %v805_v48 = vmax.f32 %v773_v44, 0.0  ;;  %v698_v41 = vadd.f32 %v697_v45, %v696_v2  ;;  %v215_v60 = vunpack.c.l.bf16 %v1956_v11  ;;  %1215 = vmatpush.xpose.msrb.mxu0 %v940_v37 }
  0x6f   :  { %v491_v49 = vrot.slane %v490_v47, 2  ;;  %v327_v52 = vunpack.c.l.bf16 %v1962_v26  ;;  %v458_v9 = vadd.f32 %v457_v4, %v183_v29  ;;  %v666_v30 = vadd.f32 %v665_v43, %v295_v36 }
  0x70   :  { %v821_v59 = vmax.f32 %v789_v42, 0.0  ;;  %v699_v8 = vrot.slane %v698_v41, 2  ;;  %v461_v62 = vsel %vm356_vm0, %v231_v23, 0.0  ;;  %v669_v20 = vsel %vm356_vm0, %v343_v17, 0.0 }
  0x71   :  { %v492_v19 = vadd.f32 %v491_v49, %v490_v47  ;;  %v459_v0 = vadd.f32 %v458_v9, %v199_v31  ;;  %v667_v33 = vadd.f32 %v666_v30, %v311_v5  ;;  %v138_v39 = vunpack.c.h.bf16 %v1796_v12 }
  0x72   :  { %v882_v61 = vsel %vm876_vm1, %v821_v59, %v805_v48  ;;  %v700_v40 = vadd.f32 %v699_v8, %v698_v41  ;;  %v154_v32 = vunpack.c.h.bf16 %v1801_v55  ;;  %v250_v14 = vunpack.c.h.bf16 %v1806_v38  ;;  %v943_v38 = vld.sshfl [vmem:[#allocation1 + $0x38] sm:$0xff pattern:$0x75316420] }
  0x73   :  { %1076 = vmatmul.f32.vlgmr.msrb.gmra.mxu1 %v882_v61  ;;  %v493_v29 = vrot.slane %v492_v19, 1  ;;  %v460_v2 = vadd.f32 %v459_v0, %v215_v60  ;;  %v668_v28 = vadd.f32 %v667_v33, %v327_v52  ;;  %v266_v23 = vunpack.c.h.bf16 %v1814_v18  ;;  %1275 = vmatpush.xpose.msrb.mxu3 %v943_v38 }
  0x74   :  { %v701_v36 = vrot.slane %v700_v40, 1  ;;  %v170_v35 = vunpack.c.h.bf16 %v1820_v6  ;;  %v186_v31 = vunpack.c.h.bf16 %v1825_v57  ;;  %v202_v12 = vunpack.c.h.bf16 %v1830_v22 }
  0x75   :  { %v494_v46 = vadd.f32 %v493_v29, %v492_v19  ;;  %v462_v44 = vadd.f32 %v461_v62, %v460_v2  ;;  %v670_v45 = vadd.f32 %v669_v20, %v668_v28  ;;  %v282_v55 = vunpack.c.h.bf16 %v1835_v51 }
  0x76   :  { %v702_v17 = vadd.f32 %v701_v36, %v700_v40  ;;  %v234_v47 = vunpack.c.h.bf16 %v1843_v13  ;;  %v298_v18 = vunpack.c.h.bf16 %v1848_v58  ;;  %v495_v5 = vadd.f32 %v154_v32, %v138_v39  ;;  %v941_v36 = vld.sshfl [vmem:[#allocation1 + $0x28] sm:$0xff pattern:$0x75316420] }
  0x77   :  { %v778_v6 = vmul.f32 0.020408163, %v494_v46  ;;  %v463_v4 = vrot.slane %v462_v44, 4  ;;  %v671_v57 = vrot.slane %v670_v45, 4  ;;  %v703_v43 = vadd.f32 %v266_v23, %v250_v14  ;;  %1235 = vmatpush.xpose.msrb.mxu1 %v941_v36 }
  0x78   :  { %v794_v22 = vmul.f32 0.020408163, %v702_v17  ;;  %v314_v42 = vunpack.c.h.bf16 %v1857_v63  ;;  %v346_v48 = vunpack.c.h.bf16 %v1862_v25  ;;  %v496_v41 = vadd.f32 %v495_v5, %v170_v35 }
  0x79   :  { %v810_v51 = vmax.f32 %v778_v6, 0.0  ;;  %v464_v60 = vadd.f32 %v463_v4, %v462_v44  ;;  %v672_v49 = vadd.f32 %v671_v57, %v670_v45  ;;  %v704_v52 = vadd.f32 %v703_v43, %v282_v55 }
  0x7a   :  { %v826_v9 = vmax.f32 %v794_v22, 0.0  ;;  %v218_v13 = vunpack.c.h.bf16 %v1870_v1  ;;  %v330_v58 = vunpack.c.h.bf16 %v1875_v56  ;;  %v497_v30 = vadd.f32 %v496_v41, %v186_v31  ;;  %v2016_v22 = vld [vmem:[%s2221_s0 + $0x1f8] sm:$0xff] }
  0x7b   :  { %v465_v59 = vrot.slane %v464_v60, 2  ;;  %v673_v8 = vrot.slane %v672_v49, 2  ;;  %v500_v62 = vsel %vm356_vm0, %v234_v47, 0.0  ;;  %v705_v20 = vadd.f32 %v704_v52, %v298_v18 }
  0x7c   :  { %v887_v63 = vsel %vm876_vm1, %v826_v9, %v810_v51  ;;  %v498_v19 = vadd.f32 %v497_v30, %v202_v12  ;;  %v708_v25 = vsel %vm356_vm0, %v346_v48, 0.0  ;;  %v136_v0 = vunpack.c.h.bf16 %v1882_v16 }
  0x7d   :  { %1176 = vmatmul.f32.vlgmr.msra.gmra.mxu2 %v887_v63  ;;  %v466_v33 = vadd.f32 %v465_v59, %v464_v60  ;;  %v674_v39 = vadd.f32 %v673_v8, %v672_v49  ;;  %v706_v61 = vadd.f32 %v705_v20, %v314_v42  ;;  %v152_v1 = vunpack.c.h.bf16 %v1889_v15  ;;  %v2021_v42 = vld [vmem:[%s2221_s0 + $0x238] sm:$0xff] }
  0x7e   :  { %v499_v56 = vadd.f32 %v498_v19, %v218_v13  ;;  %v168_v40 = vunpack.c.h.bf16 %v1906_v10  ;;  %v248_v32 = vunpack.c.h.bf16 %v1894_v7  ;;  %v264_v14 = vunpack.c.h.bf16 %v1899_v34  ;;  %v2033_v49 = vld [vmem:[%s2221_s0 + $0xf8] sm:$0xff] }
  0x7f   :  { %v467_v29 = vrot.slane %v466_v33, 1  ;;  %v675_v2 = vrot.slane %v674_v39, 1  ;;  %v707_v28 = vadd.f32 %v706_v61, %v330_v58  ;;  %v184_v23 = vunpack.c.h.bf16 %v1913_v50  ;;  %v2038_v13 = vld [vmem:[%s2221_s0 + $0x138] sm:$0xff] }
  0x80   :  { %v501_v16 = vadd.f32 %v500_v62, %v499_v56  ;;  %v200_v35 = vunpack.c.h.bf16 %v1918_v21  ;;  %v232_v31 = vunpack.c.h.bf16 %v1928_v53  ;;  %v280_v15 = vunpack.c.h.bf16 %v1923_v54  ;;  %v2043_v58 = vld [vmem:[%s2221_s0 + $0x278] sm:$0xff] }
  0x81   :  { %v468_v12 = vadd.f32 %v467_v29, %v466_v33  ;;  %v676_v10 = vadd.f32 %v675_v2, %v674_v39  ;;  %v709_v37 = vadd.f32 %v708_v25, %v707_v28  ;;  %v469_v7 = vadd.f32 %v152_v1, %v136_v0  ;;  %v2050_v20 = vld [vmem:[%s2221_s0 + $0x1b8] sm:$0x11] }
  0x82   :  { %v502_v46 = vrot.slane %v501_v16, 4  ;;  %v296_v34 = vunpack.c.h.bf16 %v1936_v24  ;;  %v344_v44 = vunpack.c.h.bf16 %v1942_v27  ;;  %v677_v45 = vadd.f32 %v264_v14, %v248_v32  ;;  %v2004_v24 = vld [vmem:[%s2221_s0 + $0x38] sm:$0xff] }
  0x83   :  { %v776_v50 = vmul.f32 0.020408163, %v468_v12  ;;  %v792_v55 = vmul.f32 0.020408163, %v676_v10  ;;  %v710_v38 = vrot.slane %v709_v37, 4  ;;  %v470_v17 = vadd.f32 %v469_v7, %v168_v40  ;;  %v2009_v27 = vld [vmem:[%s2221_s0 + $0x78] sm:$0xff] }
  0x84   :  { %v503_v21 = vadd.f32 %v502_v46, %v501_v16  ;;  %v216_v53 = vunpack.c.h.bf16 %v1956_v11  ;;  %v312_v54 = vunpack.c.h.bf16 %v1950_v3  ;;  %v678_v47 = vadd.f32 %v677_v45, %v280_v15  ;;  %v2057_v33 = vld [vmem:[%s2221_s0 + $0x2b8] sm:$0xff] }
  0x85   :  { %v808_v18 = vmax.f32 %v776_v50, 0.0  ;;  %v824_v5 = vmax.f32 %v792_v55, 0.0  ;;  %v711_v6 = vadd.f32 %v710_v38, %v709_v37  ;;  %v471_v4 = vadd.f32 %v470_v17, %v184_v23  ;;  %v2064_v40 = vld [vmem:[%s2221_s0 + $0x2f8] sm:$0xff] }
  0x86   :  { %v504_v57 = vrot.slane %v503_v21, 2  ;;  %v328_v11 = vunpack.c.h.bf16 %v1962_v26  ;;  %v474_v3 = vsel %vm356_vm0, %v232_v31, 0.0  ;;  %v679_v43 = vadd.f32 %v678_v47, %v296_v34  ;;  %v2028_v26 = vld [vmem:[%s2221_s0 + $0xb8] sm:$0xff] }
  0x87   :  { %v885_v48 = vsel %vm876_vm1, %v824_v5, %v808_v18  ;;  %v712_v41 = vrot.slane %v711_v6, 2  ;;  %v472_v51 = vadd.f32 %v471_v4, %v200_v35  ;;  %v682_v60 = vsel %vm356_vm0, %v344_v44, 0.0  ;;  %v2071_v28 = vld [vmem:[%s2221_s0 + $0x378] sm:$0x11]  ;;  %v2097_v4 = vld [vmem:[%s2221_s0 + $0x70] sm:$0xff] }
  0x88   :  { %1136 = vmatmul.f32.vlgmr.msra.gmra.mxu0 %v885_v48  ;;  %v505_v52 = vadd.f32 %v504_v57, %v503_v21  ;;  %v680_v9 = vadd.f32 %v679_v43, %v312_v54  ;;  %v141_v30 = vunpack.c.l.bf16 %v2004_v24  ;;  %v157_v59 = vunpack.c.l.bf16 %v2009_v27  ;;  %v2077_v31 = vld [vmem:[%s2221_s0 + $0x178] sm:$0xff]  ;;  %v2103_v43 = vld [vmem:[%s2221_s0 + $0x1f0] sm:$0xff] }
  0x89   :  { %v713_v8 = vadd.f32 %v712_v41, %v711_v6  ;;  %v473_v62 = vadd.f32 %v472_v51, %v216_v53  ;;  %v253_v63 = vunpack.c.l.bf16 %v2016_v22  ;;  %v269_v19 = vunpack.c.l.bf16 %v2021_v42  ;;  %v2083_v7 = vld [vmem:[%s2221_s0 + $0x338] sm:$0xff]  ;;  %v2092_v6 = vld [vmem:[%s2221_s0 + $0x30] sm:$0xff] }
  0x8a   :  { %v506_v25 = vrot.slane %v505_v52, 1  ;;  %v681_v0 = vadd.f32 %v680_v9, %v328_v11  ;;  %v173_v39 = vunpack.c.l.bf16 %v2028_v26  ;;  %v189_v61 = vunpack.c.l.bf16 %v2033_v49  ;;  %v2108_v48 = vld [vmem:[%s2221_s0 + $0x230] sm:$0xff] }
  0x8b   :  { %v714_v1 = vrot.slane %v713_v8, 1  ;;  %v475_v56 = vadd.f32 %v474_v3, %v473_v62  ;;  %v205_v32 = vunpack.c.l.bf16 %v2038_v13  ;;  %v285_v14 = vunpack.c.l.bf16 %v2043_v58  ;;  %v2115_v9 = vld [vmem:[%s2221_s0 + $0xb0] sm:$0xff] }
  0x8c   :  { %v507_v29 = vadd.f32 %v506_v25, %v505_v52  ;;  %v683_v2 = vadd.f32 %v682_v60, %v681_v0  ;;  %v237_v23 = vunpack.c.l.bf16 %v2050_v20  ;;  %v534_v36 = vadd.f32 %v157_v59, %v141_v30  ;;  %v2120_v30 = vld [vmem:[%s2221_s0 + $0xf0] sm:$0xff] }
  0x8d   :  { %v715_v16 = vadd.f32 %v714_v1, %v713_v8  ;;  %v476_v35 = vrot.slane %v475_v56, 4  ;;  %v301_v15 = vunpack.c.l.bf16 %v2057_v33  ;;  %v742_v12 = vadd.f32 %v269_v19, %v253_v63  ;;  %v2125_v62 = vld [vmem:[%s2221_s0 + $0x130] sm:$0xff] }
  0x8e   :  { %v779_v10 = vmul.f32 0.020408163, %v507_v29  ;;  %v684_v37 = vrot.slane %v683_v2, 4  ;;  %v317_v46 = vunpack.c.l.bf16 %v2064_v40  ;;  %v535_v34 = vadd.f32 %v534_v36, %v173_v39  ;;  %v2130_v63 = vld [vmem:[%s2221_s0 + $0x270] sm:$0xff] }
  0x8f   :  { %v795_v44 = vmul.f32 0.020408163, %v715_v16  ;;  %v477_v45 = vadd.f32 %v476_v35, %v475_v56  ;;  %v349_v50 = vunpack.c.l.bf16 %v2071_v28  ;;  %v743_v55 = vadd.f32 %v742_v12, %v285_v14  ;;  %v2144_v29 = vld [vmem:[%s2221_s0 + $0x2b0] sm:$0xff] }
  0x90   :  { %v811_v38 = vmax.f32 %v779_v10, 0.0  ;;  %v685_v17 = vadd.f32 %v684_v37, %v683_v2  ;;  %v221_v21 = vunpack.c.l.bf16 %v2077_v31  ;;  %v536_v53 = vadd.f32 %v535_v34, %v189_v61  ;;  %v2137_v61 = vld [vmem:[%s2221_s0 + $0x1b0] sm:$0x11] }
  0x91   :  { %v827_v54 = vmax.f32 %v795_v44, 0.0  ;;  %v478_v47 = vrot.slane %v477_v45, 2  ;;  %v333_v18 = vunpack.c.l.bf16 %v2083_v7  ;;  %v744_v5 = vadd.f32 %v743_v55, %v301_v15  ;;  %v2151_v35 = vld [vmem:[%s2221_s0 + $0x370] sm:$0x11] }
  0x92   :  { %v686_v57 = vrot.slane %v685_v17, 2  ;;  %v537_v11 = vadd.f32 %v536_v53, %v205_v32  ;;  %v539_v3 = vsel %vm356_vm0, %v237_v23, 0.0  ;;  %v747_v52 = vsel %vm356_vm0, %v349_v50, 0.0  ;;  %v2164_v55 = vld [vmem:[%s2221_s0 + $0x170] sm:$0xff] }
  0x93   :  { %v888_v41 = vsel %vm876_vm1, %v827_v54, %v811_v38  ;;  %v479_v51 = vadd.f32 %v478_v47, %v477_v45  ;;  %v745_v60 = vadd.f32 %v744_v5, %v317_v46  ;;  %v139_v19 = vunpack.c.l.bf16 %v2092_v6  ;;  %v2158_v46 = vld [vmem:[%s2221_s0 + $0x2f0] sm:$0xff] }
  0x94   :  { %1196 = vmatmul.f32.vlgmr.msra.gmra.mxu3 %v888_v41  ;;  %v687_v59 = vadd.f32 %v686_v57, %v685_v17  ;;  %v538_v8 = vadd.f32 %v537_v11, %v221_v21  ;;  %v155_v25 = vunpack.c.l.bf16 %v2097_v4  ;;  %v251_v1 = vunpack.c.l.bf16 %v2103_v43  ;;  %v2170_v54 = vld [vmem:[%s2221_s0 + $0x330] sm:$0xff] }
  0x95   :  { %v480_v0 = vrot.slane %v479_v51, 1  ;;  %v746_v39 = vadd.f32 %v745_v60, %v333_v18  ;;  %v267_v56 = vunpack.c.l.bf16 %v2108_v48  ;;  %v171_v2 = vunpack.c.l.bf16 %v2115_v9 }
  0x96   :  { %v688_v32 = vrot.slane %v687_v59, 1  ;;  %v540_v14 = vadd.f32 %v539_v3, %v538_v8  ;;  %v187_v23 = vunpack.c.l.bf16 %v2120_v30  ;;  %v203_v15 = vunpack.c.l.bf16 %v2125_v62 }
  0x97   :  { %v481_v36 = vadd.f32 %v480_v0, %v479_v51  ;;  %v748_v16 = vadd.f32 %v747_v52, %v746_v39  ;;  %v283_v12 = vunpack.c.l.bf16 %v2130_v63  ;;  %v235_v34 = vunpack.c.l.bf16 %v2137_v61 }
  0x98   :  { %v689_v10 = vadd.f32 %v688_v32, %v687_v59  ;;  %v541_v37 = vrot.slane %v540_v14, 4  ;;  %v508_v44 = vadd.f32 %v155_v25, %v139_v19  ;;  %v299_v38 = vunpack.c.l.bf16 %v2144_v29 }
  0x99   :  { %v777_v45 = vmul.f32 0.020408163, %v481_v36  ;;  %v749_v50 = vrot.slane %v748_v16, 4  ;;  %v716_v17 = vadd.f32 %v267_v56, %v251_v1  ;;  %v347_v47 = vunpack.c.l.bf16 %v2151_v35 }
  0x9a   :  { %v793_v21 = vmul.f32 0.020408163, %v689_v10  ;;  %v542_v53 = vadd.f32 %v541_v37, %v540_v14  ;;  %v509_v18 = vadd.f32 %v508_v44, %v171_v2  ;;  %v315_v11 = vunpack.c.l.bf16 %v2158_v46 }
  0x9b   :  { %v809_v5 = vmax.f32 %v777_v45, 0.0  ;;  %v750_v57 = vadd.f32 %v749_v50, %v748_v16  ;;  %v717_v3 = vadd.f32 %v716_v17, %v283_v12  ;;  %v219_v60 = vunpack.c.l.bf16 %v2164_v55 }
  0x9c   :  { %v825_v41 = vmax.f32 %v793_v21, 0.0  ;;  %v543_v51 = vrot.slane %v542_v53, 2  ;;  %v510_v52 = vadd.f32 %v509_v18, %v187_v23  ;;  %v331_v8 = vunpack.c.l.bf16 %v2170_v54 }
  0x9d   :  { %v751_v59 = vrot.slane %v750_v57, 2  ;;  %v513_v19 = vsel %vm356_vm0, %v235_v34, 0.0  ;;  %v718_v25 = vadd.f32 %v717_v3, %v299_v38  ;;  %v721_v56 = vsel %vm356_vm0, %v347_v47, 0.0 }
  0x9e   :  { %v886_v0 = vsel %vm876_vm1, %v825_v41, %v809_v5  ;;  %v544_v39 = vadd.f32 %v543_v51, %v542_v53  ;;  %v511_v1 = vadd.f32 %v510_v52, %v203_v15  ;;  %v142_v2 = vunpack.c.h.bf16 %v2004_v24 }
  0x9f   :  { %1156 = vmatmul.f32.vlgmr.msra.gmra.mxu1 %v886_v0  ;;  %v752_v32 = vadd.f32 %v751_v59, %v750_v57  ;;  %v719_v14 = vadd.f32 %v718_v25, %v315_v11  ;;  %v158_v36 = vunpack.c.h.bf16 %v2009_v27  ;;  %v254_v12 = vunpack.c.h.bf16 %v2016_v22 }
  0xa0   :  { %v545_v23 = vrot.slane %v544_v39, 1  ;;  %v512_v16 = vadd.f32 %v511_v1, %v219_v60  ;;  %v270_v10 = vunpack.c.h.bf16 %v2021_v42  ;;  %v174_v44 = vunpack.c.h.bf16 %v2028_v26 }
  0xa1   :  { %v753_v37 = vrot.slane %v752_v32, 1  ;;  %v720_v34 = vadd.f32 %v719_v14, %v331_v8  ;;  %v190_v15 = vunpack.c.h.bf16 %v2033_v49  ;;  %v206_v38 = vunpack.c.h.bf16 %v2038_v13 }
  0xa2   :  { %v546_v45 = vadd.f32 %v545_v23, %v544_v39  ;;  %v514_v50 = vadd.f32 %v513_v19, %v512_v16  ;;  %v286_v24 = vunpack.c.h.bf16 %v2043_v58  ;;  %v238_v21 = vunpack.c.h.bf16 %v2050_v20 }
  0xa3   :  { %v754_v17 = vadd.f32 %v753_v37, %v752_v32  ;;  %v722_v27 = vadd.f32 %v721_v56, %v720_v34  ;;  %v547_v53 = vadd.f32 %v158_v36, %v142_v2  ;;  %v302_v42 = vunpack.c.h.bf16 %v2057_v33 }
  0xa4   :  { %v782_v22 = vmul.f32 0.020408163, %v546_v45  ;;  %v515_v47 = vrot.slane %v514_v50, 4  ;;  %v755_v18 = vadd.f32 %v270_v10, %v254_v12  ;;  %v350_v49 = vunpack.c.h.bf16 %v2071_v28 }
  0xa5   :  { %v798_v5 = vmul.f32 0.020408163, %v754_v17  ;;  %v723_v26 = vrot.slane %v722_v27, 4  ;;  %v548_v57 = vadd.f32 %v547_v53, %v174_v44  ;;  %v318_v13 = vunpack.c.h.bf16 %v2064_v40 }
  0xa6   :  { %v814_v11 = vmax.f32 %v782_v22, 0.0  ;;  %v516_v3 = vadd.f32 %v515_v47, %v514_v50  ;;  %v756_v58 = vadd.f32 %v755_v18, %v286_v24  ;;  %v222_v20 = vunpack.c.h.bf16 %v2077_v31 }
  0xa7   :  { %v830_v41 = vmax.f32 %v798_v5, 0.0  ;;  %v724_v51 = vadd.f32 %v723_v26, %v722_v27  ;;  %v549_v60 = vadd.f32 %v548_v57, %v190_v15  ;;  %v334_v59 = vunpack.c.h.bf16 %v2083_v7 }
  0xa8   :  { %v517_v52 = vrot.slane %v516_v3, 2  ;;  %v552_v33 = vsel %vm356_vm0, %v238_v21, 0.0  ;;  %v757_v8 = vadd.f32 %v756_v58, %v302_v42  ;;  %v760_v0 = vsel %vm356_vm0, %v350_v49, 0.0 }
  0xa9   :  { %v891_v19 = vsel %vm876_vm1, %v830_v41, %v814_v11  ;;  %v725_v28 = vrot.slane %v724_v51, 2  ;;  %v550_v25 = vadd.f32 %v549_v60, %v206_v38  ;;  %v140_v1 = vunpack.c.h.bf16 %v2092_v6 }
  0xaa   :  { %1256 = vmatmul.f32.vlgmr.msrb.gmra.mxu2 %v891_v19  ;;  %v518_v40 = vadd.f32 %v517_v52, %v516_v3  ;;  %v758_v39 = vadd.f32 %v757_v8, %v318_v13  ;;  %v156_v31 = vunpack.c.h.bf16 %v2097_v4  ;;  %v252_v7 = vunpack.c.h.bf16 %v2103_v43 }
  0xab   :  { %v726_v56 = vadd.f32 %v725_v28, %v724_v51  ;;  %v551_v32 = vadd.f32 %v550_v25, %v222_v20  ;;  %v268_v14 = vunpack.c.h.bf16 %v2108_v48  ;;  %v172_v23 = vunpack.c.h.bf16 %v2115_v9 }
  0xac   :  { %v519_v2 = vrot.slane %v518_v40, 1  ;;  %v759_v36 = vadd.f32 %v758_v39, %v334_v59  ;;  %v188_v16 = vunpack.c.h.bf16 %v2120_v30  ;;  %v204_v37 = vunpack.c.h.bf16 %v2125_v62 }
  0xad   :  { %v727_v12 = vrot.slane %v726_v56, 1  ;;  %v553_v10 = vadd.f32 %v552_v33, %v551_v32  ;;  %v284_v6 = vunpack.c.h.bf16 %v2130_v63  ;;  %v220_v44 = vunpack.c.h.bf16 %v2164_v55 }
  0xae   :  { %v520_v34 = vadd.f32 %v519_v2, %v518_v40  ;;  %v761_v4 = vadd.f32 %v760_v0, %v759_v36  ;;  %v521_v15 = vadd.f32 %v156_v31, %v140_v1  ;;  %v300_v48 = vunpack.c.h.bf16 %v2144_v29 }
  0xaf   :  { %v728_v43 = vadd.f32 %v727_v12, %v726_v56  ;;  %v554_v45 = vrot.slane %v553_v10, 4  ;;  %v729_v50 = vadd.f32 %v268_v14, %v252_v7  ;;  %v236_v30 = vunpack.c.h.bf16 %v2137_v61 }
  0xb0   :  { %v780_v38 = vmul.f32 0.020408163, %v520_v34  ;;  %v762_v9 = vrot.slane %v761_v4, 4  ;;  %v522_v24 = vadd.f32 %v521_v15, %v172_v23  ;;  %v316_v62 = vunpack.c.h.bf16 %v2158_v46  ;;  %v1017_v15 = vpop.f32.mrf.mxu2 }
  0xb1   :  { %v796_v17 = vmul.f32 0.020408163, %v728_v43  ;;  %v555_v27 = vadd.f32 %v554_v45, %v553_v10  ;;  %v730_v63 = vadd.f32 %v729_v50, %v284_v6  ;;  %v348_v55 = vunpack.c.h.bf16 %v2151_v35  ;;  %v977_v6 = vpop.f32.mrf.mxu0 }
  0xb2   :  { %v812_v21 = vmax.f32 %v780_v38, 0.0  ;;  %v763_v53 = vadd.f32 %v762_v9, %v761_v4  ;;  %v523_v22 = vadd.f32 %v522_v24, %v188_v16  ;;  %v332_v29 = vunpack.c.h.bf16 %v2170_v54 }
  0xb3   :  { %v828_v47 = vmax.f32 %v796_v17, 0.0  ;;  %v556_v42 = vrot.slane %v555_v27, 2  ;;  %v731_v18 = vadd.f32 %v730_v63, %v300_v48  ;;  %v526_v57 = vsel %vm356_vm0, %v236_v30, 0.0 }
  0xb4   :  { %v764_v5 = vrot.slane %v763_v53, 2  ;;  %v524_v26 = vadd.f32 %v523_v22, %v204_v37  ;;  %v734_v13 = vsel %vm356_vm0, %v348_v55, 0.0  ;;  %v1299_v37 = vld [vmem:[%s2223_s2] ss:$0 sm:$0xff]  ;;  %s1326_s2 = smov [#allocation2]   ;;  %vm1280_vm2 = vcmask 25600  }
  0xb5   :  { %v889_v61 = vsel %vm876_vm1, %v828_v47, %v812_v21  ;;  %v557_v49 = vadd.f32 %v556_v42, %v555_v27  ;;  %v732_v11 = vadd.f32 %v731_v18, %v316_v62  ;;  %v978_v34 = vadd.f32 %v1299_v37, %v977_v6  ;;  %s1287_s30 = sshll.u32 %s1326_s2, 4  ;;  %s1288_s30 = int_to_ptr.vmem [resolvable:$true] %s1287_s30 }
  0xb6   :  { %1216 = vmatmul.f32.vlgmr.msrb.gmra.mxu0 %v889_v61  ;;  %v765_v46 = vadd.f32 %v764_v5, %v763_v53  ;;  %v525_v3 = vadd.f32 %v524_v26, %v220_v44 }
  0xb7   :  { %v558_v35 = vrot.slane %v557_v49, 1  ;;  %v733_v58 = vadd.f32 %v732_v11, %v332_v29 }
  0xb8   :  { %v766_v41 = vrot.slane %v765_v46, 1  ;;  %v527_v51 = vadd.f32 %v526_v57, %v525_v3 }
  0xb9   :  { %v559_v20 = vadd.f32 %v558_v35, %v557_v49  ;;  %v735_v54 = vadd.f32 %v734_v13, %v733_v58  ;;  %v1037_v45 = vpop.f32.mrf.mxu3 }
  0xba   :  { %v767_v60 = vadd.f32 %v766_v41, %v765_v46  ;;  %v528_v52 = vrot.slane %v527_v51, 4 }
  0xbb   :  { %v783_v59 = vmul.f32 0.020408163, %v559_v20  ;;  %v736_v33 = vrot.slane %v735_v54, 4 }
  0xbc   :  { %v799_v8 = vmul.f32 0.020408163, %v767_v60  ;;  %v529_v19 = vadd.f32 %v528_v52, %v527_v51 }
  0xbd   :  { %v815_v28 = vmax.f32 %v783_v59, 0.0  ;;  %v737_v25 = vadd.f32 %v736_v33, %v735_v54 }
  0xbe   :  { %v831_v0 = vmax.f32 %v799_v8, 0.0  ;;  %v530_v40 = vrot.slane %v529_v19, 2 }
  0xbf   :  { %v738_v39 = vrot.slane %v737_v25, 2 }
  0xc0   :  { %v892_v1 = vsel %vm876_vm1, %v831_v0, %v815_v28  ;;  %v531_v31 = vadd.f32 %v530_v40, %v529_v19 }
  0xc1   :  { %1276 = vmatmul.f32.vlgmr.msrb.gmra.mxu3 %v892_v1  ;;  %v739_v56 = vadd.f32 %v738_v39, %v737_v25 }
  0xc2   :  { %v532_v32 = vrot.slane %v531_v31, 1 }
  0xc3   :  { %v740_v7 = vrot.slane %v739_v56, 1  ;;  %v997_v4 = vpop.f32.mrf.mxu1 }
  0xc4   :  { %v533_v14 = vadd.f32 %v532_v32, %v531_v31  ;;  %v998_v44 = vadd.f32 %v997_v4, %v978_v34 }
  0xc5   :  { %v741_v2 = vadd.f32 %v740_v7, %v739_v56 }
  0xc6   :  { %v781_v36 = vmul.f32 0.020408163, %v533_v14  ;;  %v1018_v43 = vadd.f32 %v1017_v15, %v998_v44 }
  0xc7   :  { %v797_v23 = vmul.f32 0.020408163, %v741_v2 }
  0xc8   :  { %v813_v16 = vmax.f32 %v781_v36, 0.0  ;;  %v1038_v48 = vadd.f32 %v1037_v45, %v1018_v43 }
  0xc9   :  { %v829_v12 = vmax.f32 %v797_v23, 0.0 }
  0xcb   :  { %v890_v10 = vsel %vm876_vm1, %v829_v12, %v813_v16 }
  0xcc   :  { %1236 = vmatmul.f32.vlgmr.msrb.gmra.mxu1 %v890_v10 }
  0xd4   :  { %v1097_v24 = vpop.f32.mrf.mxu2 }
  0xd7   :  { %v1057_v50 = vpop.f32.mrf.mxu0 }
  0xd8   :  { %v1058_v38 = vadd.f32 %v1057_v50, %v1038_v48 }
  0xea   :  { %v1117_v27 = vpop.f32.mrf.mxu3 }
  0xf0   :  { %v1077_v9 = vpop.f32.mrf.mxu1 }
  0xf1   :  { %v1078_v30 = vadd.f32 %v1077_v9, %v1058_v38 }
  0xf3   :  { %v1098_v17 = vadd.f32 %v1097_v24, %v1078_v30 }
  0xf5   :  { %v1118_v62 = vadd.f32 %v1117_v27, %v1098_v17 }
 0x100   :  { %v1177_v22 = vpop.f32.mrf.mxu2 }
 0x105   :  { %v1137_v63 = vpop.f32.mrf.mxu0 }
 0x106   :  { %v1138_v21 = vadd.f32 %v1137_v63, %v1118_v62 }
 0x117   :  { %v1197_v42 = vpop.f32.mrf.mxu3 }
 0x11c   :  { %v1157_v53 = vpop.f32.mrf.mxu1 }
 0x11d   :  { %v1158_v55 = vadd.f32 %v1157_v53, %v1138_v21 }
 0x11f   :  { %v1178_v47 = vadd.f32 %v1177_v22, %v1158_v55 }
 0x121   :  { %v1198_v29 = vadd.f32 %v1197_v42, %v1178_v47 }
 0x12d   :  { %v1257_v61 = vpop.f32.mrf.mxu2 }
 0x133   :  { %v1217_v18 = vpop.f32.mrf.mxu0 }
 0x134   :  { %v1218_v5 = vadd.f32 %v1217_v18, %v1198_v29 }
 0x144   :  { %v1277_v57 = vpop.f32.mrf.mxu3 }
 0x149   :  { %v1237_v26 = vpop.f32.mrf.mxu1 }
 0x14a   :  { %v1238_v49 = vadd.f32 %v1237_v26, %v1218_v5 }
 0x14c   :  { %v1258_v11 = vadd.f32 %v1257_v61, %v1238_v49 }
 0x14e   :  { %v1278_v46 = vadd.f32 %v1277_v57, %v1258_v11 }
 0x150   :  { %1281 = vst.msk [vmem:[#allocation2] sm:$0x3] %vm1280_vm2, %v1278_v46 }
 0x151   :  { %1292 = dma.vmem_to_hbm [thread:$0]  %s1288_s30, 32, %s1290_s6, [#allocation3]  }
 0x152   :  { %1324 = dma.done.wait [#allocation3], 32  }
 0x153   :  { %1325 = vsyncadd [#allocation3], 4294967264 }
 0x154   :  { %1297 = vsyncpa [#allocation3], 1 }

</bundles_post_ra>
